<compile_context>
chip_gen: v7x
topology: tpu7x:2x2x1
jax: 0.10.0
libtpu: 0.0.40
codegen_flags: <defaults>
</compile_context>

<pallas_src>
import jax
import jax.numpy as jnp
from jax import lax
from jax.experimental import pallas as pl
from jax.experimental.pallas import tpu as pltpu


# ----------------------------------------------------------------------------
# Pallas kernel: fused 4-layer MLP forward (BN pre-folded into weights)
# ----------------------------------------------------------------------------
def _mlp_kernel(x_ref,
                w1_ref, b1_ref,
                w2_ref, b2_ref,
                w3_ref, b3_ref,
                wo_ref, bo_ref,
                o_ref):
    # layer 1 + relu  (bf16 operands, f32 accumulate)
    x = x_ref[...].astype(jnp.bfloat16)
    h1 = jnp.dot(x, w1_ref[...], preferred_element_type=jnp.float32) + b1_ref[...]
    h1 = jnp.maximum(h1, 0.0)

    # layer 2 + relu  (BN1 folded into w2/b2)
    h2 = jnp.dot(h1.astype(jnp.bfloat16), w2_ref[...],
                 preferred_element_type=jnp.float32) + b2_ref[...]
    h2 = jnp.maximum(h2, 0.0)

    # layer 3 + relu  (BN2 folded into w3/b3)
    h3 = jnp.dot(h2.astype(jnp.bfloat16), w3_ref[...],
                 preferred_element_type=jnp.float32) + b3_ref[...]
    h3 = jnp.maximum(h3, 0.0)

    # BN3 folded into output layer; dropout is identity in eval mode.
    # Lane-dense final projection: (1, 64) x (TM, 64) -> (1, TM) row.
    z = lax.dot_general(
        wo_ref[...], h3,
        dimension_numbers=(((1,), (1,)), ((), ())),
        preferred_element_type=jnp.float32) + bo_ref[...]

    # sigmoid: exp + reciprocal on the EUP (dense (1, TM) row)
    e = jnp.exp(-z)
    o_ref[...] = pl.reciprocal(1.0 + e, approx=True)


# ----------------------------------------------------------------------------
# Wrapper: batch-tiled pallas_call with resident weights, lane-dense output
# ----------------------------------------------------------------------------
def _round_up(n, m):
    return ((n + m - 1) // m) * m


def mlp_forward(x, fp, *, tm=2048):
    """x: [B, D_in] f32; fp: folded params from fold_params()."""
    B, D = x.shape
    H1, H2, H3 = 256, 128, 64

    # Batch tile selection:
    #  * small batch: single tile (rounded up to a sublane multiple);
    #  * large batch: at least 2 tiles (v7x has 2 TCs that split "parallel"
    #    grid axes), TM a multiple of 128 for lane-dense stores, capped at
    #    `tm` (~2048) to amortize per-step overhead without VMEM pressure.
    if B <= 256:
        TM = _round_up(max(B, 8), 8)
    else:
        TM = min(_round_up(tm, 128), _round_up(pl.cdiv(B, 2), 128))

    num_tiles = pl.cdiv(B, TM)          # ragged last block: no wrapper pad
    B_pad = num_tiles * TM

    def resident(shape):
        return pl.BlockSpec(shape, lambda i: (0, 0))

    w_bytes = 2 * (D * H1 + H1 * H2 + H2 * H3) + 4 * (H1 + H2 + H3 + H3 + 1)
    flops = 2 * B * (D * H1 + H1 * H2 + H2 * H3 + H3)

    out = pl.pallas_call(
        _mlp_kernel,
        out_shape=jax.ShapeDtypeStruct((1, B_pad), jnp.float32),
        grid=(num_tiles,),
        in_specs=[
            pl.BlockSpec((TM, D), lambda i: (i, 0)),   # x tile (pipelined)
            resident((D, H1)), resident((1, H1)),      # w1, b1
            resident((H1, H2)), resident((1, H2)),     # w2', b2'
            resident((H2, H3)), resident((1, H3)),     # w3', b3'
            resident((1, H3)), resident((1, 1)),       # wo' (row), bo'
        ],
        out_specs=pl.BlockSpec((1, TM), lambda i: (0, i)),   # lane-dense row
        compiler_params=pltpu.CompilerParams(
            dimension_semantics=("parallel",)),
        cost_estimate=pl.CostEstimate(
            flops=flops,
            transcendentals=B,
            bytes_accessed=B * D * 4 + w_bytes + B * 4),
    )(x,
      fp["w1"], fp["b1"],
      fp["w2"], fp["b2"],
      fp["w3"], fp["b3"],
      fp["wo_row"], fp["bo"])

    # (1, B_pad) dense row -> (B, 1) column; overhang lanes are dropped.
    return out.reshape(-1)[:B].reshape(B, 1)


# ----------------------------------------------------------------------------
# Deterministic parameter initialization (mirrors the nn.Module __init__)
# ----------------------------------------------------------------------------
def _kaiming_uniform(key, fan_in, fan_out):
    # kaiming_uniform_(nonlinearity='relu'): bound = sqrt(6 / fan_in)
    bound = jnp.sqrt(6.0 / fan_in)
    # stored [in, out] so the kernel does x @ W
    return jax.random.uniform(key, (fan_in, fan_out), jnp.float32, -bound, bound)


def _xavier_uniform(key, fan_in, fan_out):
    bound = jnp.sqrt(6.0 / (fan_in + fan_out))
    return jax.random.uniform(key, (fan_in, fan_out), jnp.float32, -bound, bound)


def _linear_bias(key, fan_in, fan_out):
    # PyTorch Linear default bias init: U(-1/sqrt(fan_in), 1/sqrt(fan_in))
    bound = 1.0 / jnp.sqrt(fan_in)
    return jax.random.uniform(key, (1, fan_out), jnp.float32, -bound, bound)


def _bn_fold(gamma, beta, running_mean, running_var, eps=1e-5):
    # y = gamma * (x - mean) / sqrt(var + eps) + beta  ->  y = x * scale + shift
    scale = gamma / jnp.sqrt(running_var + eps)
    shift = beta - running_mean * scale
    return scale.reshape(1, -1), shift.reshape(1, -1)


def init_params(key, input_size):
    ks = jax.random.split(key, 8)
    p = {}
    p["w1"] = _kaiming_uniform(ks[0], input_size, 256)
    p["b1"] = _linear_bias(ks[1], input_size, 256)
    p["w2"] = _kaiming_uniform(ks[2], 256, 128)
    p["b2"] = _linear_bias(ks[3], 256, 128)
    p["w3"] = _kaiming_uniform(ks[4], 128, 64)
    p["b3"] = _linear_bias(ks[5], 128, 64)
    p["wo"] = _xavier_uniform(ks[6], 64, 1)
    p["bo"] = _linear_bias(ks[7], 64, 1)

    # BatchNorm params at PyTorch defaults: gamma=1, beta=0, mean=0, var=1
    for name, dim in (("1", 256), ("2", 128), ("3", 64)):
        gamma = jnp.ones((dim,), jnp.float32)
        beta = jnp.zeros((dim,), jnp.float32)
        rmean = jnp.zeros((dim,), jnp.float32)
        rvar = jnp.ones((dim,), jnp.float32)
        s, t = _bn_fold(gamma, beta, rmean, rvar)
        p["s" + name] = s
        p["t" + name] = t
    return p


def fold_params(p):
    """Fold each BN (scale s, shift t), which follows a ReLU, into the NEXT
    linear layer:  (h*s + t) @ W + b == h @ (s[:,None]*W) + (t @ W + b)."""
    f = {}
    f["w1"] = p["w1"].astype(jnp.bfloat16)
    f["b1"] = p["b1"]

    w2f = p["s1"].reshape(-1, 1) * p["w2"]
    f["w2"] = w2f.astype(jnp.bfloat16)
    f["b2"] = p["b2"] + p["t1"] @ p["w2"]

    w3f = p["s2"].reshape(-1, 1) * p["w3"]
    f["w3"] = w3f.astype(jnp.bfloat16)
    f["b3"] = p["b3"] + p["t2"] @ p["w3"]

    wof = p["s3"].reshape(-1, 1) * p["wo"]            # (64, 1)
    f["wo_row"] = wof.reshape(1, -1)                  # (1, 64) f32
    f["bo"] = p["bo"] + p["t3"] @ p["wo"]             # (1, 1)
    return f


# ----------------------------------------------------------------------------
# Pure-JAX (f32, unfolded) reference for sanity checking
# ----------------------------------------------------------------------------
def mlp_reference(x, p):
    h = jnp.maximum(x @ p["w1"] + p["b1"], 0.0) * p["s1"] + p["t1"]
    h = jnp.maximum(h @ p["w2"] + p["b2"], 0.0) * p["s2"] + p["t2"]
    h = jnp.maximum(h @ p["w3"] + p["b3"], 0.0) * p["s3"] + p["t3"]
    z = h @ p["wo"] + p["bo"]
    return jax.nn.sigmoid(z)


if __name__ == "__main__":
    input_size = 32
    batch = 8

    key = jax.random.PRNGKey(0)
    k_param, k_x = jax.random.split(key)
    params = init_params(k_param, input_size)
    folded = fold_params(params)
    x = jax.random.normal(k_x, (batch, input_size), jnp.float32)

    out = jax.block_until_ready(mlp_forward(x, folded))
    ref = mlp_reference(x, params)

    assert out.shape == (batch, 1), out.shape
    max_err = float(jnp.max(jnp.abs(out - ref)))
    # bf16 matmul operands + approx reciprocal -> loose-but-meaningful bound
    assert max_err < 3e-2, "mismatch vs reference: max abs err = %e" % max_err

    print("KERNEL_OK")
</pallas_src>

<mosaic_0001>
module attributes {stable_mosaic.version = 11 : i64} {
  func.func @_mlp_kernel(%arg0: i32, %arg1: memref<8x32xf32, #tpu.memory_space<vmem>>, %arg2: memref<32x256xbf16, #tpu.memory_space<vmem>>, %arg3: memref<1x256xf32, #tpu.memory_space<vmem>>, %arg4: memref<256x128xbf16, #tpu.memory_space<vmem>>, %arg5: memref<1x128xf32, #tpu.memory_space<vmem>>, %arg6: memref<128x64xbf16, #tpu.memory_space<vmem>>, %arg7: memref<1x64xf32, #tpu.memory_space<vmem>>, %arg8: memref<1x64xf32, #tpu.memory_space<vmem>>, %arg9: memref<1x1xf32, #tpu.memory_space<vmem>>, %arg10: memref<1x8xf32, #tpu.memory_space<vmem>>) attributes {dimension_semantics = [#tpu.dimension_semantics<parallel>], iteration_bounds = array<i64: 1>, scalar_prefetch = 0 : i64, scratch_operands = 0 : i64, tpu.core_type = #tpu.core_type<tc>, window_params = [{transform_indices = @transform_0, window_bounds = array<i64: 8, 32>}, {pipeline_mode = #tpu.pipeline_mode<synchronous>, transform_indices = @transform_1, window_bounds = array<i64: 32, 256>}, {pipeline_mode = #tpu.pipeline_mode<synchronous>, transform_indices = @transform_2, window_bounds = array<i64: 1, 256>}, {pipeline_mode = #tpu.pipeline_mode<synchronous>, transform_indices = @transform_3, window_bounds = array<i64: 256, 128>}, {pipeline_mode = #tpu.pipeline_mode<synchronous>, transform_indices = @transform_4, window_bounds = array<i64: 1, 128>}, {pipeline_mode = #tpu.pipeline_mode<synchronous>, transform_indices = @transform_5, window_bounds = array<i64: 128, 64>}, {pipeline_mode = #tpu.pipeline_mode<synchronous>, transform_indices = @transform_6, window_bounds = array<i64: 1, 64>}, {pipeline_mode = #tpu.pipeline_mode<synchronous>, transform_indices = @transform_7, window_bounds = array<i64: 1, 64>}, {pipeline_mode = #tpu.pipeline_mode<synchronous>, transform_indices = @transform_8, window_bounds = array<i64: 1, 1>}, {transform_indices = @transform_9, window_bounds = array<i64: 1, 8>}]} {
    %c0 = arith.constant 0 : index
    %c0_0 = arith.constant 0 : index
    %0 = vector.load %arg1[%c0, %c0_0] : memref<8x32xf32, #tpu.memory_space<vmem>>, vector<8x32xf32>
    %1 = arith.truncf %0 : vector<8x32xf32> to vector<8x32xbf16>
    %c0_1 = arith.constant 0 : index
    %c0_2 = arith.constant 0 : index
    %2 = vector.load %arg2[%c0_1, %c0_2] : memref<32x256xbf16, #tpu.memory_space<vmem>>, vector<32x256xbf16>
    %cst = arith.constant dense<0.000000e+00> : vector<8x256xf32>
    %3 = tpu.matmul %1, %2, %cst {dimension_numbers = #tpu.dot_dimension_numbers<[1], [0], [0], [1], [0, 0, 1, 1], [], []>} : vector<8x32xbf16>, vector<32x256xbf16>, vector<8x256xf32> -> vector<8x256xf32>
    %c0_3 = arith.constant 0 : index
    %c0_4 = arith.constant 0 : index
    %4 = vector.load %arg3[%c0_3, %c0_4] : memref<1x256xf32, #tpu.memory_space<vmem>>, vector<1x256xf32>
    %5 = vector.broadcast %4 : vector<1x256xf32> to vector<8x256xf32>
    %6 = arith.addf %3, %5 : vector<8x256xf32>
    %cst_5 = arith.constant 0.000000e+00 : f32
    %7 = vector.broadcast %cst_5 : f32 to vector<8x256xf32>
    %8 = arith.maximumf %6, %7 : vector<8x256xf32>
    %9 = arith.truncf %8 : vector<8x256xf32> to vector<8x256xbf16>
    %c0_6 = arith.constant 0 : index
    %c0_7 = arith.constant 0 : index
    %10 = vector.load %arg4[%c0_6, %c0_7] : memref<256x128xbf16, #tpu.memory_space<vmem>>, vector<256x128xbf16>
    %cst_8 = arith.constant dense<0.000000e+00> : vector<8x128xf32>
    %11 = tpu.matmul %9, %10, %cst_8 {dimension_numbers = #tpu.dot_dimension_numbers<[1], [0], [0], [1], [0, 0, 1, 1], [], []>} : vector<8x256xbf16>, vector<256x128xbf16>, vector<8x128xf32> -> vector<8x128xf32>
    %c0_9 = arith.constant 0 : index
    %c0_10 = arith.constant 0 : index
    %12 = vector.load %arg5[%c0_9, %c0_10] : memref<1x128xf32, #tpu.memory_space<vmem>>, vector<1x128xf32>
    %13 = vector.broadcast %12 : vector<1x128xf32> to vector<8x128xf32>
    %14 = arith.addf %11, %13 : vector<8x128xf32>
    %cst_11 = arith.constant 0.000000e+00 : f32
    %15 = vector.broadcast %cst_11 : f32 to vector<8x128xf32>
    %16 = arith.maximumf %14, %15 : vector<8x128xf32>
    %17 = arith.truncf %16 : vector<8x128xf32> to vector<8x128xbf16>
    %c0_12 = arith.constant 0 : index
    %c0_13 = arith.constant 0 : index
    %18 = vector.load %arg6[%c0_12, %c0_13] : memref<128x64xbf16, #tpu.memory_space<vmem>>, vector<128x64xbf16>
    %cst_14 = arith.constant dense<0.000000e+00> : vector<8x64xf32>
    %19 = tpu.matmul %17, %18, %cst_14 {dimension_numbers = #tpu.dot_dimension_numbers<[1], [0], [0], [1], [0, 0, 1, 1], [], []>} : vector<8x128xbf16>, vector<128x64xbf16>, vector<8x64xf32> -> vector<8x64xf32>
    %c0_15 = arith.constant 0 : index
    %c0_16 = arith.constant 0 : index
    %20 = vector.load %arg7[%c0_15, %c0_16] : memref<1x64xf32, #tpu.memory_space<vmem>>, vector<1x64xf32>
    %21 = vector.broadcast %20 : vector<1x64xf32> to vector<8x64xf32>
    %22 = arith.addf %19, %21 : vector<8x64xf32>
    %cst_17 = arith.constant 0.000000e+00 : f32
    %23 = vector.broadcast %cst_17 : f32 to vector<8x64xf32>
    %24 = arith.maximumf %22, %23 : vector<8x64xf32>
    %c0_18 = arith.constant 0 : index
    %c0_19 = arith.constant 0 : index
    %25 = vector.load %arg8[%c0_18, %c0_19] : memref<1x64xf32, #tpu.memory_space<vmem>>, vector<1x64xf32>
    %cst_20 = arith.constant dense<0.000000e+00> : vector<1x8xf32>
    %26 = tpu.matmul %25, %24, %cst_20 {dimension_numbers = #tpu.dot_dimension_numbers<[1], [1], [0], [0], [0, 0, 1, 0], [], []>} : vector<1x64xf32>, vector<8x64xf32>, vector<1x8xf32> -> vector<1x8xf32>
    %c0_21 = arith.constant 0 : index
    %c0_22 = arith.constant 0 : index
    %27 = vector.load %arg9[%c0_21, %c0_22] : memref<1x1xf32, #tpu.memory_space<vmem>>, vector<1x1xf32>
    %28 = vector.broadcast %27 : vector<1x1xf32> to vector<1x8xf32>
    %29 = arith.addf %26, %28 : vector<1x8xf32>
    %cst_23 = arith.constant 0.000000e+00 : f32
    %30 = vector.broadcast %cst_23 : f32 to vector<1x8xf32>
    %31 = arith.subf %30, %29 : vector<1x8xf32>
    %32 = math.exp %31 : vector<1x8xf32>
    %cst_24 = arith.constant 1.000000e+00 : f32
    %33 = vector.broadcast %cst_24 : f32 to vector<1x8xf32>
    %34 = arith.addf %33, %32 : vector<1x8xf32>
    %35 = tpu.reciprocal %34 {approx = true} : vector<1x8xf32> -> vector<1x8xf32>
    %c0_25 = arith.constant 0 : index
    %c0_26 = arith.constant 0 : index
    %36 = vector.load %arg10[%c0_25, %c0_26] : memref<1x8xf32, #tpu.memory_space<vmem>>, vector<1x8xf32>
    tpu.vector_store %arg10[%c0_25, %c0_26], %35 {strides = array<i32>} : memref<1x8xf32, #tpu.memory_space<vmem>>, vector<1x8xf32>,
    return
  }
  func.func @transform_0(%arg0: i32) -> (i32, i32) {
    %c0_i32 = arith.constant 0 : i32
    %c0_i32_0 = arith.constant 0 : i32
    return %arg0, %c0_i32 : i32, i32
  }
  func.func @transform_1(%arg0: i32) -> (i32, i32) {
    %c0_i32 = arith.constant 0 : i32
    %c0_i32_0 = arith.constant 0 : i32
    %c0_i32_1 = arith.constant 0 : i32
    return %c0_i32, %c0_i32_0 : i32, i32
  }
  func.func @transform_2(%arg0: i32) -> (i32, i32) {
    %c0_i32 = arith.constant 0 : i32
    %c0_i32_0 = arith.constant 0 : i32
    %c0_i32_1 = arith.constant 0 : i32
    return %c0_i32, %c0_i32_0 : i32, i32
  }
  func.func @transform_3(%arg0: i32) -> (i32, i32) {
    %c0_i32 = arith.constant 0 : i32
    %c0_i32_0 = arith.constant 0 : i32
    %c0_i32_1 = arith.constant 0 : i32
    return %c0_i32, %c0_i32_0 : i32, i32
  }
  func.func @transform_4(%arg0: i32) -> (i32, i32) {
    %c0_i32 = arith.constant 0 : i32
    %c0_i32_0 = arith.constant 0 : i32
    %c0_i32_1 = arith.constant 0 : i32
    return %c0_i32, %c0_i32_0 : i32, i32
  }
  func.func @transform_5(%arg0: i32) -> (i32, i32) {
    %c0_i32 = arith.constant 0 : i32
    %c0_i32_0 = arith.constant 0 : i32
    %c0_i32_1 = arith.constant 0 : i32
    return %c0_i32, %c0_i32_0 : i32, i32
  }
  func.func @transform_6(%arg0: i32) -> (i32, i32) {
    %c0_i32 = arith.constant 0 : i32
    %c0_i32_0 = arith.constant 0 : i32
    %c0_i32_1 = arith.constant 0 : i32
    return %c0_i32, %c0_i32_0 : i32, i32
  }
  func.func @transform_7(%arg0: i32) -> (i32, i32) {
    %c0_i32 = arith.constant 0 : i32
    %c0_i32_0 = arith.constant 0 : i32
    %c0_i32_1 = arith.constant 0 : i32
    return %c0_i32, %c0_i32_0 : i32, i32
  }
  func.func @transform_8(%arg0: i32) -> (i32, i32) {
    %c0_i32 = arith.constant 0 : i32
    %c0_i32_0 = arith.constant 0 : i32
    %c0_i32_1 = arith.constant 0 : i32
    return %c0_i32, %c0_i32_0 : i32, i32
  }
  func.func @transform_9(%arg0: i32) -> (i32, i32) {
    %c0_i32 = arith.constant 0 : i32
    %c0_i32_0 = arith.constant 0 : i32
    return %c0_i32, %arg0 : i32, i32
  }
}

</mosaic_0001>

<bundles_post_ra>
// kernel: tpu_custom_call.1
= control target key start
LH: loop header
LB: loop body
LE: loop exit
PB: predicated region body
PF: predicated region fallthrough
CT: control target
= control target key end

     0   :  { %s852_s0 = inlined_call_operand.vmem [shape: f32[8,32], index: 0, kind: input, shape index: {}]   ;;  %s853_s1 = inlined_call_operand.vmem [shape: bf16[32,256], index: 1, kind: input, shape index: {}]   ;;  %s854_s2 = inlined_call_operand.vmem [shape: f32[1,256], index: 2, kind: input, shape index: {}]   ;;  %s855_s3 = inlined_call_operand.hbm [shape: bf16[256,128], index: 3, kind: input, shape index: {}]   ;;  %s856_s4 = inlined_call_operand.vmem [shape: f32[1,128], index: 4, kind: input, shape index: {}]   ;;  %s857_s5 = inlined_call_operand.vmem [shape: bf16[128,64], index: 5, kind: input, shape index: {}]   ;;  %s858_s6 = inlined_call_operand.vmem [shape: f32[1,64], index: 6, kind: input, shape index: {}]   ;;  %s859_s7 = inlined_call_operand.vmem [shape: f32[1,64], index: 7, kind: input, shape index: {}]   ;;  %s860_s8 = inlined_call_operand.<no memory space> [shape: f32[1,1], index: 8, kind: input, shape index: {}]   ;;  %s861_s9 = inlined_call_operand.hbm [shape: f32[1,8], index: 9, kind: output, shape index: {}]  }
   0x1   :  { %v14_v0 = vstv %s860_s8 }
   0x2   :  { %15 = vst [vmem:[#allocation2] sm:$0x1] %v14_v0 }
   0x3   :  { %16 = vsyncpa [#allocation4], 0 }
   0x4   :  { %17 = vsyncpa [#allocation5], 0  ;;  %s717_s11 = smov [#allocation3]   ;;  %s669_s15 = scalar_lea.hbm %s855_s3, 2048 }
   0x5   :  { %s29_s12 = sshll.u32 %s717_s11, 4  ;;  %p670_p0 = scmp.ne.s32.totalorder %s855_s3, %s669_s15  ;;  %s30_s12 = int_to_ptr.vmem [resolvable:$true] %s29_s12 }
   0x6   :  { %p673_p1 = scmp.lt.u32.totalorder %s669_s15, %s855_s3 }
   0x8   :  { %p675_p2 = pnand %p673_p1, %p670_p0 }
   0xa   :  { %678 = shalt.err (!%p675_p2)
}
   0xb   :  { %s679_s8 = scalar_lea.vmem %s30_s12, 2048  ;;  %p684_p4 = scmp.lt.s32.totalorder %s30_s12, %s30_s12 }
   0xc   :  { %p680_p3 = scmp.ne.s32.totalorder %s30_s12, %s679_s8  ;;  %p685_p5 = scmp.lt.s32.totalorder %s679_s8, %s679_s8 }
   0xe   :  { %p686_p6 = por %p685_p5, %p684_p4 }
  0x10   :  { %p687_p7 = pnand %p686_p6, %p680_p3 }
  0x12   :  { %690 = shalt.err (!%p687_p7)
}
  0x13   :  { %s718_s20 = smov 64   ;;  %s719_s21 = smov 4  }
  0x14   :  { %35 = dma.hbm_to_vmem [thread:$0]  %s855_s3, 2048, %s30_s12, [#allocation4], %s718_s20, %s718_s20, %s719_s21  }
  0x15   :  { %713 = dma.done.wait [#allocation4], 2048  }
  0x16   :  { %714 = vsyncadd [#allocation4], 4294965248  ;;  %v720_v1 = vmov 0   ;;  %v635_v2 = vld [vmem:[%s853_s1 + $0x4] ss:$8 sps:$4 sm:$0xff]   ;;  %vm88_vm0 = vcmask 261120   ;;  %v58_v31 = vlaneseq }
  0x17   :  { %124 = vmatprep.mubr.bf16.mxu0 %v720_v1  ;;  %634 = vset.pattern.permute.xlu0 %v720_v1  ;;  %v637_v3 = vld [vmem:[%s853_s1] ss:$8 sps:$4 sm:$0xff]   ;;  %v638_v4 = vld [vmem:[%s853_s1 + $0x14] ss:$8 sps:$4 sm:$0xff]   ;;  %v640_v5 = vld [vmem:[%s853_s1 + $0x10] ss:$8 sps:$4 sm:$0xff]  }
  0x18   :  { %92 = vmatprep.subr.bf16.mxu0 %v635_v2  ;;  %v50_v6 = vld [vmem:[%s852_s0] sm:$0xff]  ;;  %v643_v9 = vld [vmem:[#allocation3 + $0x48] sm:$0xff]   ;;  %v645_v12 = vld [vmem:[#allocation3 + $0x50] sm:$0xff]   ;;  %v721_v25 = vmov 0.0   ;;  %v59_v32 = vshrl.u32 %v58_v31, 7  ;;  %vm722_vm1 = vmmov 0  }
  0x19   :  { %93 = vmatpush1.bf16.msra.mxu0 %v637_v3  ;;  %v641_v7 = vld [vmem:[#allocation3 + $0x40] sm:$0xff]   ;;  %v51_v10 = vpack.c.bf16 %v50_v6, %v50_v6  ;;  %v644_v11 = vld [vmem:[#allocation3 + $0x8] sm:$0xff]   ;;  %v646_v13 = vld [vmem:[#allocation3 + $0x10] sm:$0xff]   ;;  %vm437_vm2 = vcmask 523264   ;;  %vm519_vm3 = vcmask 57344  }
  0x1a   :  { %94 = vmatprep.subr.bf16.mxu0 %v638_v4  ;;  %v642_v8 = vld [vmem:[#allocation3] sm:$0xff]   ;;  %569 = vmatprep.subr.bf16.mxu1 %v641_v7  ;;  %v647_v14 = vld [vmem:[#allocation3 + $0x58] sm:$0xff]   ;;  %v651_v18 = vld [vmem:[#allocation3 + $0x68] sm:$0xff]   ;;  %v60_v33 = vsub.s32 0, %v59_v32  ;;  %v64_v35 = vsub.s32 1, %v59_v32 }
  0x1b   :  { %570 = vmatpush3.bf16.msra.mxu1 %v642_v8  ;;  %v648_v15 = vld [vmem:[#allocation3 + $0x18] sm:$0xff]   ;;  %v649_v16 = vld [vmem:[#allocation3 + $0x60] sm:$0xff]   ;;  %v652_v19 = vld [vmem:[#allocation3 + $0x28] sm:$0xff]  }
  0x1c   :  { %571 = vmatprep.subr.bf16.mxu1 %v643_v9  ;;  %v650_v17 = vld [vmem:[#allocation3 + $0x20] sm:$0xff]   ;;  %v653_v20 = vld [vmem:[#allocation3 + $0x70] sm:$0xff]   ;;  %v655_v22 = vld [vmem:[#allocation3 + $0x78] sm:$0xff]  }
  0x1d   :  { %95 = vmatpush1.bf16.msra.mxu0 %v640_v5  ;;  %v654_v21 = vld [vmem:[#allocation3 + $0x30] sm:$0xff]   ;;  %v656_v23 = vld [vmem:[#allocation3 + $0x38] sm:$0xff]   ;;  %v658_v26 = vld [vmem:[%s857_s5 + $0x8] sm:$0xff]  }
  0x1e   :  { %v657_v24 = vld [vmem:[%s857_s5] sm:$0xff]   ;;  %602 = vmatprep.subr.bf16.mxu0 %v721_v25  ;;  %v659_v27 = vld [vmem:[%s857_s5 + $0x10] sm:$0xff]   ;;  %v660_v28 = vld [vmem:[%s857_s5 + $0x18] sm:$0xff]  }
  0x1f   :  { %572 = vmatpush3.bf16.msra.mxu1 %v644_v11  ;;  %v661_v29 = vld [vmem:[%s857_s5 + $0x20] sm:$0xff]   ;;  %v662_v30 = vld [vmem:[%s857_s5 + $0x28] sm:$0xff]   ;;  %v663_v48 = vld [vmem:[%s857_s5 + $0x30] sm:$0xff]  }
  0x20   :  { %540 = vmatmul.mubr.msk.bf16.vlgmr.msra.gmra.mrb[0].mxu0 %vm88_vm0, %v51_v10  ;;  %573 = vmatprep.subr.bf16.mxu1 %v645_v12  ;;  %v56_v34 = vld [vmem:[%s854_s2] sm:$0x3]  ;;  %v664_v49 = vld [vmem:[%s857_s5 + $0x38] sm:$0xff]  }
  0x21   :  { %603 = vmatpush3.bf16.msra.mxu0 %v657_v24  ;;  %v61_v36 = vrot.slane %v56_v34, %v60_v33  ;;  %v65_v37 = vrot.slane %v56_v34, %v64_v35  ;;  %618 = vmatprep.mubr.msk.bf16.mxu0 %vm722_vm1, %v721_v25  ;;  %v541_v51 = vld [vmem:[%s856_s4] ss:$0 sm:$0xff] }
  0x22   :  { %604 = vmatprep.subr.bf16.mxu0 %v721_v25  ;;  %v427_v59 = vld [vmem:[#allocation2] sm:$0x1] }
  0x23   :  { %574 = vmatpush3.bf16.msra.mxu1 %v646_v13  ;;  %430 = vperm.xlu0 %634, %v427_v59   ;;  %v558_v60 = vld [vmem:[%s858_s6] ss:$0 sm:$0xff]  ;;  %s723_s6 = smov [#allocation6]  }
  0x24   :  { %575 = vmatprep.subr.bf16.mxu1 %v647_v14  ;;  %v426_v3 = vld [vmem:[%s859_s7] sm:$0x1]  ;;  %s527_s30 = sshll.u32 %s723_s6, 4  ;;  %s528_s30 = int_to_ptr.vmem [resolvable:$true] %s527_s30 }
  0x25   :  { %605 = vmatpush3.bf16.msra.mxu0 %v658_v26  ;;  %s691_s3 = scalar_lea.vmem %s528_s30, 16  ;;  %s695_s7 = scalar_lea.vmem %s528_s30, 32 }
  0x26   :  { %606 = vmatprep.subr.bf16.mxu0 %v721_v25  ;;  %p692_p8 = scmp.ne.s32.totalorder %s528_s30, %s691_s3  ;;  %p696_p9 = scmp.lt.s32.totalorder %s528_s30, %s528_s30 }
  0x27   :  { %576 = vmatpush3.bf16.msra.mxu1 %v648_v15  ;;  %p697_p10 = scmp.lt.s32.totalorder %s695_s7, %s691_s3 }
  0x28   :  { %577 = vmatprep.subr.bf16.mxu1 %v649_v16 }
  0x29   :  { %607 = vmatpush3.bf16.msra.mxu0 %v659_v27  ;;  %p698_p11 = por %p697_p10, %p696_p9 }
  0x2a   :  { %608 = vmatprep.subr.bf16.mxu0 %v721_v25 }
  0x2b   :  { %578 = vmatpush3.bf16.msra.mxu1 %v650_v17  ;;  %p699_p12 = pnand %p698_p11, %p692_p8 }
  0x2c   :  { %579 = vmatprep.subr.bf16.mxu1 %v651_v18 }
  0x2d   :  { %609 = vmatpush3.bf16.msra.mxu0 %v660_v28 }
  0x2e   :  { %610 = vmatprep.subr.bf16.mxu0 %v721_v25 }
  0x2f   :  { %580 = vmatpush3.bf16.msra.mxu1 %v652_v19 }
  0x30   :  { %581 = vmatprep.subr.bf16.mxu1 %v653_v20 }
  0x31   :  { %611 = vmatpush3.bf16.msra.mxu0 %v661_v29 }
  0x32   :  { %612 = vmatprep.subr.bf16.mxu0 %v721_v25 }
  0x33   :  { %582 = vmatpush3.bf16.msra.mxu1 %v654_v21 }
  0x34   :  { %583 = vmatprep.subr.bf16.mxu1 %v655_v22 }
  0x35   :  { %613 = vmatpush3.bf16.msra.mxu0 %v662_v30 }
  0x36   :  { %614 = vmatprep.subr.bf16.mxu0 %v721_v25 }
  0x37   :  { %584 = vmatpush3.bf16.msra.mxu1 %v656_v23 }
  0x38   :  { %622 = vmatprep.subr.mxu1 %v721_v25 }
  0x39   :  { %615 = vmatpush3.bf16.msra.mxu0 %v663_v48 }
  0x3a   :  { %616 = vmatprep.subr.bf16.mxu0 %v721_v25 }
  0x3d   :  { %617 = vmatpush3.bf16.msra.mxu0 %v664_v49 }
  0xa2   :  { %v431_v4 = vpop.permute.xlu0 %430 }
  0xa3   :  { %v436_v5 = vrot.slane %v431_v4, %v60_v33 }
  0xf3   :  { %v126_v38 = vpop.f32.mrb[0].mxu0 }
  0xf4   :  { %v127_v39 = vadd.f32 %v126_v38, %v61_v36  ;;  %v128_v40 = vpop.f32.mrb[1].mxu0 }
  0xf5   :  { %v129_v41 = vadd.f32 %v128_v40, %v65_v37  ;;  %v130_v42 = vpop.f32.mrb[2].mxu0 }
  0xf6   :  { %v133_v43 = vmax.f32 %v127_v39, 0.0  ;;  %v131_v44 = vpop.f32.mrb[3].mxu0 }
  0xf7   :  { %v134_v45 = vmax.f32 %v129_v41, 0.0 }
  0xf8   :  { %v135_v47 = vpack.c.bf16 %v133_v43, %v133_v43 }
  0xf9   :  { %v136_v46 = vpack.c.bf16 %v134_v45, %v134_v45 }
  0xfb   :  { %304 = vmatprep.mubr.bf16.mxu1 %v136_v46 }
  0xfc   :  { %305 = vmatmul.mubr.bf16.vlgmr.msra.gmra.mrb[0].mxu1 %v135_v47 }
  0xfd   :  { %624 = vmatprep.mubr.msk.f32.mxu1 %vm722_vm1, %v721_v25 }
 0x1cf   :  { %v585_v50 = vpop.f32.mrb[0].mxu1 }
 0x1d0   :  { %v586_v52 = vpop.f32.mrb[1].mxu1 }
 0x1d1   :  { %v587_v53 = vadd.f32 %v586_v52, %v585_v50  ;;  %v588_v54 = vpop.f32.mrb[2].mxu1 }
 0x1d2   :  { %v589_v55 = vpop.f32.mrb[3].mxu1 }
 0x1d3   :  { %v307_v56 = vadd.f32 %v587_v53, %v541_v51 }
 0x1d5   :  { %v312_v57 = vmax.f32 %v307_v56, 0.0 }
 0x1d7   :  { %v313_v58 = vpack.c.bf16 %v312_v57, %v312_v57 }
 0x1d9   :  { %619 = vmatmul.mubr.bf16.vlgmr.msra.gmra.mrb[4].mxu0 %v313_v58 }
 0x2ac   :  { %v419_v61 = vpop.f32.mrb[4].mxu0 }
 0x2ad   :  { %v420_v62 = vadd.f32 %v558_v60, %v419_v61  ;;  %v620_v63 = vpop.f32.mrb[5].mxu0 }
 0x2ae   :  { %v422_v0 = vpop.f32.mrb[6].mxu0 }
 0x2af   :  { %v425_v1 = vmax.f32 %v420_v62, 0.0  ;;  %v621_v2 = vpop.f32.mrb[7].mxu0 }
 0x2b1   :  { %623 = vmatpush3.xpose.msk.msra.mxu1 %vm437_vm2, %v425_v1 }
 0x2b4   :  { %625 = vmatmul.mubr.msk.f32.vlgmr.msra.gmra.mrb[4].mxu1 %vm437_vm2, %v426_v3 }
 0x387   :  { %v510_v6 = vpop.f32.mrb[4].mxu1 }
 0x388   :  { %v511_v7 = vadd.f32 %v510_v6, %v436_v5  ;;  %v626_v8 = vpop.f32.mrb[5].mxu1 }
 0x38a   :  { %v514_v9 = vsub.f32 0.0, %v511_v7 }
 0x38c   :  { %v515_v10 = vmul.f32 1.442695, %v514_v9 }
 0x38e   :  { %665 = vpow2.f32 %v515_v10 }
 0x398   :  { %v666_v11 = vpop.eup %665 }
 0x399   :  { %v517_v12 = vadd.f32 1.0, %v666_v11 }
 0x39b   :  { %667 = vrcp.f32 %v517_v12 }
 0x3a5   :  { %v668_v13 = vpop.eup %667 }
 0x3a6   :  { %520 = vst.msk [vmem:[#allocation6] sm:$0x1] %vm519_vm3, %v668_v13 }
 0x3a7   :  { %702 = shalt.err (!%p699_p12)
}
 0x3a8   :  { %s703_s0 = scalar_lea.hbm %s861_s9, 16 }
 0x3a9   :  { %p704_p13 = scmp.ne.s32.totalorder %s861_s9, %s703_s0  ;;  %p707_p0 = scmp.lt.u32.totalorder %s703_s0, %s861_s9 }
 0x3ab   :  { %p709_p1 = pnand %p707_p0, %p704_p13 }
 0x3ad   :  { %712 = shalt.err (!%p709_p1)
}
 0x3ae   :  { %530 = dma.vmem_to_hbm [thread:$0]  %s528_s30, 16, %s861_s9, [#allocation5]  }
 0x3af   :  { %715 = dma.done.wait [#allocation5], 16  }
 0x3b0   :  { %716 = vsyncadd [#allocation5], 4294967280 }
 0x3b1   :  { %534 = vsyncpa [#allocation4], 1 }
 0x3b2   :  { %535 = vsyncpa [#allocation5], 1 }

</bundles_post_ra>
